<compile_context>
chip_gen: v6e
topology: v6e:2x2x1
jax: 0.10.0
libtpu: 0.0.40
codegen_flags: <defaults>
</compile_context>

<pallas_src>
import functools

import jax
import jax.numpy as jnp
import numpy as np
from jax.experimental import pallas as pl
from jax.experimental.pallas import tpu as pltpu

_BLOCK_BYTES_BUDGET = 4 * 1024 * 1024    # per pipelined block (x or out)
_VMEM_LIMIT_BYTES = 32 * 1024 * 1024     # safe scoped limit on v5e / v6e / v7x


# ----------------------------------------------------------------------------
# Fused kernel: whole (Bt, C, HW) block per grid step.
# ----------------------------------------------------------------------------
def _dyrelu_fused_kernel(x_ref, w1t_ref, b1_ref, w2_ref, aux_ref, o_ref, *, k):
    xb = x_ref[...].astype(jnp.float32)                    # (Bt, C, HW)

    # Spatial mean per channel (f32 accumulation even for bf16 inputs).
    # NOTE: single-stage mean over H*W == reference's two-stage mean up to fp
    # rounding; fine at normal tolerances.
    theta = jnp.mean(xb, axis=-1, keepdims=True)           # (Bt, C, 1)

    # fc1 + ReLU.  w1t is (C, Cr) (in x out).  Tiny -> VPU/XLU broadcast-sum.
    h = jnp.sum(theta * w1t_ref[...][None], axis=1, keepdims=True)   # (Bt, 1, Cr)
    h = jnp.maximum(h + b1_ref[...][None], 0.0)                      # (Bt, 1, Cr)

    # fc2 + (2*sigmoid - 1).  w2 is (2k, Cr) (PyTorch out x in).
    t = jnp.sum(w2_ref[...][None] * h, axis=2, keepdims=True)        # (Bt, 2k, 1)

    aux = aux_ref[...]                                     # (2k, 3): [b2 | lambdas | init_v]
    t = 2.0 * jax.nn.sigmoid(t + aux[:, 0:1][None]) - 1.0             # (Bt, 2k, 1)
    coefs = t * aux[:, 1:2][None] + aux[:, 2:3][None]                 # (Bt, 2k, 1)

    # out = max_j ( x * a_j + c_j ); a_j = coefs[:, j], c_j = coefs[:, k+j]
    res = xb * coefs[:, 0:1, :] + coefs[:, k:k + 1, :]
    for j in range(1, k):
        res = jnp.maximum(res, xb * coefs[:, j:j + 1, :] + coefs[:, k + j:k + j + 1, :])

    o_ref[...] = res.astype(o_ref.dtype)


def _dyrelu_a_fused(x, w1, b1, w2, b2, lambdas, init_v, *, k):
    B, C, H, W = x.shape
    HW = H * W
    Cr = w1.shape[0]
    K2 = 2 * k
    itemsize = jnp.dtype(x.dtype).itemsize
    per_sample_bytes = C * HW * itemsize

    # Pick Bt: fill the per-block VMEM budget, but keep >= 2 grid steps so the
    # "parallel" batch axis can shard across v7x's two TensorCores.
    bt_cap = max(1, _BLOCK_BYTES_BUDGET // per_sample_bytes)
    if B >= 2:
        bt_cap = min(bt_cap, max(1, B // 2))
    Bt = max(d for d in range(1, B + 1) if B % d == 0 and d <= bt_cap)

    x2 = x.reshape(B, C, HW)

    w1t = jnp.asarray(w1, jnp.float32).T.reshape(C, Cr)       # in x out
    b1_2 = jnp.asarray(b1, jnp.float32).reshape(1, Cr)
    w2_2 = jnp.asarray(w2, jnp.float32).reshape(K2, Cr)       # out x in
    aux = jnp.stack([jnp.asarray(b2, jnp.float32),
                     jnp.asarray(lambdas, jnp.float32),
                     jnp.asarray(init_v, jnp.float32)], axis=1)  # (2k, 3)

    const_map = lambda b: (0, 0)

    out = pl.pallas_call(
        functools.partial(_dyrelu_fused_kernel, k=k),
        out_shape=jax.ShapeDtypeStruct((B, C, HW), x.dtype),
        grid_spec=pltpu.PrefetchScalarGridSpec(
            num_scalar_prefetch=0,
            grid=(B // Bt,),
            in_specs=[
                pl.BlockSpec((Bt, C, HW), lambda b: (b, 0, 0)),   # x
                pl.BlockSpec((C, Cr), const_map),                 # fc1 weight^T
                pl.BlockSpec((1, Cr), const_map),                 # fc1 bias
                pl.BlockSpec((K2, Cr), const_map),                # fc2 weight
                pl.BlockSpec((K2, 3), const_map),                 # [b2, lambdas, init_v]
            ],
            out_specs=pl.BlockSpec((Bt, C, HW), lambda b: (b, 0, 0)),
        ),
        compiler_params=pltpu.CompilerParams(
            dimension_semantics=("parallel",),
            vmem_limit_bytes=_VMEM_LIMIT_BYTES),
    )(x2, w1t, b1_2, w2_2, aux)

    return out.reshape(B, C, H, W)


# ----------------------------------------------------------------------------
# Tiled-apply kernel: coefs precomputed, x flattened to (B, 1, C*H*W).
# ----------------------------------------------------------------------------
def _dyrelu_apply_kernel(coef_ref, x_ref, o_ref, *, k):
    xr = x_ref[...].astype(jnp.float32)                    # (1, 1, Nt)
    cf = coef_ref[...]                                     # (1, 1, 2k)
    res = xr * cf[:, :, 0:1] + cf[:, :, k:k + 1]
    for j in range(1, k):
        res = jnp.maximum(res, xr * cf[:, :, j:j + 1] + cf[:, :, k + j:k + j + 1])
    o_ref[...] = res.astype(o_ref.dtype)


def _dyrelu_a_tiled(x, w1, b1, w2, b2, lambdas, init_v, *, k, spatial_tile=None):
    B, C, H, W = x.shape
    N = C * H * W
    K2 = 2 * k
    itemsize = jnp.dtype(x.dtype).itemsize

    # Tiny per-sample MLP in plain XLA (one (B, C) mean + two small matmuls).
    xf32 = x.astype(jnp.float32)
    theta = xf32.mean(axis=(-2, -1))                                       # (B, C)
    h = jnp.maximum(theta @ jnp.asarray(w1, jnp.float32).T
                    + jnp.asarray(b1, jnp.float32), 0.0)                   # (B, Cr)
    t = h @ jnp.asarray(w2, jnp.float32).T + jnp.asarray(b2, jnp.float32)  # (B, 2k)
    t = 2.0 * jax.nn.sigmoid(t) - 1.0
    coefs = (t * jnp.asarray(lambdas, jnp.float32)[None, :]
             + jnp.asarray(init_v, jnp.float32)[None, :])                  # (B, 2k)
    coefs = coefs.reshape(B, 1, K2)

    if spatial_tile is None:
        nt = max(128, (_BLOCK_BYTES_BUDGET // itemsize) // 128 * 128)
        spatial_tile = min(N, nt)
    nt = spatial_tile

    xf = x.reshape(B, 1, N)
    out = pl.pallas_call(
        functools.partial(_dyrelu_apply_kernel, k=k),
        out_shape=jax.ShapeDtypeStruct((B, 1, N), x.dtype),
        grid_spec=pltpu.PrefetchScalarGridSpec(
            num_scalar_prefetch=0,
            grid=(B, pl.cdiv(N, nt)),
            in_specs=[
                pl.BlockSpec((1, 1, K2), lambda b, s: (b, 0, 0)),   # per-sample coefs
                pl.BlockSpec((1, 1, nt), lambda b, s: (b, 0, s)),   # x (lane-dense)
            ],
            out_specs=pl.BlockSpec((1, 1, nt), lambda b, s: (b, 0, s)),
        ),
        compiler_params=pltpu.CompilerParams(
            dimension_semantics=("parallel", "parallel"),
            vmem_limit_bytes=_VMEM_LIMIT_BYTES),
    )(coefs, xf)

    return out.reshape(B, C, H, W)


# ----------------------------------------------------------------------------
# Public wrapper.
# ----------------------------------------------------------------------------
def dyrelu_a_pallas(x, w1, b1, w2, b2, lambdas, init_v, *, k=2,
                    force_tiled=False, spatial_tile=None):
    """x: (B, C, H, W).  w1: (Cr, C), b1: (Cr,), w2: (2k, Cr), b2: (2k,)."""
    B, C, H, W = x.shape
    itemsize = jnp.dtype(x.dtype).itemsize
    per_sample_bytes = C * H * W * itemsize
    if force_tiled or per_sample_bytes > _BLOCK_BYTES_BUDGET:
        return _dyrelu_a_tiled(x, w1, b1, w2, b2, lambdas, init_v, k=k,
                               spatial_tile=spatial_tile)
    return _dyrelu_a_fused(x, w1, b1, w2, b2, lambdas, init_v, k=k)


def dyrelu_a_reference(x, w1, b1, w2, b2, lambdas, init_v, *, k=2):
    """Pure-JAX reference mirroring the PyTorch DyReLUA forward."""
    theta = x.mean(axis=-1).mean(axis=-1)                     # (B, C)
    h = jnp.maximum(theta @ w1.T + b1, 0.0)                   # (B, Cr)
    t = h @ w2.T + b2                                         # (B, 2k)
    t = 2.0 * jax.nn.sigmoid(t) - 1.0
    coefs = t * lambdas[None, :] + init_v[None, :]            # (B, 2k)
    a = coefs[:, :k][:, None, None, None, :]                  # (B,1,1,1,k)
    c = coefs[:, k:][:, None, None, None, :]
    out = jnp.max(x[..., None] * a + c, axis=-1)              # (B, C, H, W)
    return out


if __name__ == "__main__":
    # Module config: channels=8, reduction=4, k=2, conv_type='2d'
    B, C, H, W = 2, 8, 16, 16
    reduction, k = 4, 2
    Cr = C // reduction
    K2 = 2 * k

    key = jax.random.PRNGKey(0)
    kx, k1, k2, k3, k4 = jax.random.split(key, 5)

    x = jax.random.normal(kx, (B, C, H, W), jnp.float32)

    # Deterministic synthetic parameters (PyTorch Linear layout: (out, in)).
    bound1 = 1.0 / np.sqrt(C)
    w1 = jax.random.uniform(k1, (Cr, C), jnp.float32, -bound1, bound1)
    b1 = jax.random.uniform(k2, (Cr,), jnp.float32, -bound1, bound1)
    bound2 = 1.0 / np.sqrt(Cr)
    w2 = jax.random.uniform(k3, (K2, Cr), jnp.float32, -bound2, bound2)
    b2 = jax.random.uniform(k4, (K2,), jnp.float32, -bound2, bound2)

    lambdas = jnp.array([1.0] * k + [0.5] * k, jnp.float32)
    init_v = jnp.array([1.0] + [0.0] * (2 * k - 1), jnp.float32)

    ref = dyrelu_a_reference(x, w1, b1, w2, b2, lambdas, init_v, k=k)

    # Fused path (default at this shape): batched blocks, single read/write of x.
    out_fused = jax.block_until_ready(
        dyrelu_a_pallas(x, w1, b1, w2, b2, lambdas, init_v, k=k))
    np.testing.assert_allclose(np.asarray(out_fused), np.asarray(ref),
                               rtol=1e-4, atol=1e-4)

    # Spatially tiled path (used automatically for large C*H*W); exercised here
    # with a 512-lane tile to validate the scalable layout.
    out_tiled = jax.block_until_ready(
        dyrelu_a_pallas(x, w1, b1, w2, b2, lambdas, init_v, k=k,
                        force_tiled=True, spatial_tile=512))
    np.testing.assert_allclose(np.asarray(out_tiled), np.asarray(ref),
                               rtol=1e-4, atol=1e-4)

    print("KERNEL_OK")
</pallas_src>

<mosaic_0001>
module attributes {stable_mosaic.version = 11 : i64} {
  func.func @_dyrelu_fused_kernel(%arg0: i32, %arg1: memref<1x8x256xf32, #tpu.memory_space<vmem>>, %arg2: memref<8x2xf32, #tpu.memory_space<vmem>>, %arg3: memref<1x2xf32, #tpu.memory_space<vmem>>, %arg4: memref<4x2xf32, #tpu.memory_space<vmem>>, %arg5: memref<4x3xf32, #tpu.memory_space<vmem>>, %arg6: memref<1x8x256xf32, #tpu.memory_space<vmem>>) attributes {dimension_semantics = [#tpu.dimension_semantics<parallel>], iteration_bounds = array<i64: 2>, scalar_prefetch = 0 : i64, scratch_operands = 0 : i64, tpu.core_type = #tpu.core_type<tc>, window_params = [{transform_indices = @transform_0, window_bounds = array<i64: 1, 8, 256>}, {pipeline_mode = #tpu.pipeline_mode<synchronous>, transform_indices = @transform_1, window_bounds = array<i64: 8, 2>}, {pipeline_mode = #tpu.pipeline_mode<synchronous>, transform_indices = @transform_2, window_bounds = array<i64: 1, 2>}, {pipeline_mode = #tpu.pipeline_mode<synchronous>, transform_indices = @transform_3, window_bounds = array<i64: 4, 2>}, {pipeline_mode = #tpu.pipeline_mode<synchronous>, transform_indices = @transform_4, window_bounds = array<i64: 4, 3>}, {transform_indices = @transform_5, window_bounds = array<i64: 1, 8, 256>}]} {
    %c0 = arith.constant 0 : index
    %c0_0 = arith.constant 0 : index
    %c0_1 = arith.constant 0 : index
    %0 = vector.load %arg1[%c0, %c0_0, %c0_1] : memref<1x8x256xf32, #tpu.memory_space<vmem>>, vector<1x8x256xf32>
    %cst = arith.constant dense<0.000000e+00> : vector<1x8xf32>
    %1 = vector.multi_reduction <add>, %0, %cst [2] : vector<1x8x256xf32> to vector<1x8xf32>
    %2 = vector.shape_cast %1 : vector<1x8xf32> to vector<1x8x1xf32>
    %cst_2 = arith.constant 2.560000e+02 : f32
    %3 = vector.broadcast %cst_2 : f32 to vector<1x8x1xf32>
    %4 = arith.divf %2, %3 : vector<1x8x1xf32>
    %c0_3 = arith.constant 0 : index
    %c0_4 = arith.constant 0 : index
    %5 = vector.load %arg2[%c0_3, %c0_4] : memref<8x2xf32, #tpu.memory_space<vmem>>, vector<8x2xf32>
    %6 = vector.shape_cast %5 : vector<8x2xf32> to vector<1x8x2xf32>
    %7 = vector.broadcast %4 : vector<1x8x1xf32> to vector<1x8x2xf32>
    %8 = arith.mulf %7, %6 : vector<1x8x2xf32>
    %cst_5 = arith.constant dense<0.000000e+00> : vector<1x2xf32>
    %9 = vector.multi_reduction <add>, %8, %cst_5 [1] : vector<1x8x2xf32> to vector<1x2xf32>
    %10 = vector.shape_cast %9 : vector<1x2xf32> to vector<1x1x2xf32>
    %c0_6 = arith.constant 0 : index
    %c0_7 = arith.constant 0 : index
    %11 = vector.load %arg3[%c0_6, %c0_7] : memref<1x2xf32, #tpu.memory_space<vmem>>, vector<1x2xf32>
    %12 = vector.shape_cast %11 : vector<1x2xf32> to vector<1x1x2xf32>
    %13 = arith.addf %10, %12 : vector<1x1x2xf32>
    %cst_8 = arith.constant 0.000000e+00 : f32
    %14 = vector.broadcast %cst_8 : f32 to vector<1x1x2xf32>
    %15 = arith.maximumf %13, %14 : vector<1x1x2xf32>
    %c0_9 = arith.constant 0 : index
    %c0_10 = arith.constant 0 : index
    %16 = vector.load %arg4[%c0_9, %c0_10] : memref<4x2xf32, #tpu.memory_space<vmem>>, vector<4x2xf32>
    %17 = vector.shape_cast %16 : vector<4x2xf32> to vector<1x4x2xf32>
    %18 = vector.broadcast %15 : vector<1x1x2xf32> to vector<1x4x2xf32>
    %19 = arith.mulf %17, %18 : vector<1x4x2xf32>
    %cst_11 = arith.constant dense<0.000000e+00> : vector<1x4xf32>
    %20 = vector.multi_reduction <add>, %19, %cst_11 [2] : vector<1x4x2xf32> to vector<1x4xf32>
    %21 = vector.shape_cast %20 : vector<1x4xf32> to vector<1x4x1xf32>
    %c0_12 = arith.constant 0 : index
    %c0_13 = arith.constant 0 : index
    %22 = vector.load %arg5[%c0_12, %c0_13] : memref<4x3xf32, #tpu.memory_space<vmem>>, vector<4x3xf32>
    %23 = vector.extract_strided_slice %22 {offsets = [0, 0], sizes = [4, 1], strides = [1, 1]} : vector<4x3xf32> to vector<4x1xf32>
    %24 = vector.shape_cast %23 : vector<4x1xf32> to vector<1x4x1xf32>
    %25 = arith.addf %21, %24 : vector<1x4x1xf32>
    %26 = arith.negf %25 : vector<1x4x1xf32>
    %27 = math.exp %26 : vector<1x4x1xf32>
    %cst_14 = arith.constant 1.000000e+00 : f32
    %28 = vector.broadcast %cst_14 : f32 to vector<1x4x1xf32>
    %29 = arith.addf %28, %27 : vector<1x4x1xf32>
    %30 = arith.divf %28, %29 : vector<1x4x1xf32>
    %cst_15 = arith.constant 2.000000e+00 : f32
    %31 = vector.broadcast %cst_15 : f32 to vector<1x4x1xf32>
    %32 = arith.mulf %31, %30 : vector<1x4x1xf32>
    %cst_16 = arith.constant 1.000000e+00 : f32
    %33 = vector.broadcast %cst_16 : f32 to vector<1x4x1xf32>
    %34 = arith.subf %32, %33 : vector<1x4x1xf32>
    %35 = vector.extract_strided_slice %22 {offsets = [0, 1], sizes = [4, 1], strides = [1, 1]} : vector<4x3xf32> to vector<4x1xf32>
    %36 = vector.shape_cast %35 : vector<4x1xf32> to vector<1x4x1xf32>
    %37 = arith.mulf %34, %36 : vector<1x4x1xf32>
    %38 = vector.extract_strided_slice %22 {offsets = [0, 2], sizes = [4, 1], strides = [1, 1]} : vector<4x3xf32> to vector<4x1xf32>
    %39 = vector.shape_cast %38 : vector<4x1xf32> to vector<1x4x1xf32>
    %40 = arith.addf %37, %39 : vector<1x4x1xf32>
    %41 = vector.extract_strided_slice %40 {offsets = [0, 0, 0], sizes = [1, 1, 1], strides = [1, 1, 1]} : vector<1x4x1xf32> to vector<1x1x1xf32>
    %42 = vector.broadcast %41 : vector<1x1x1xf32> to vector<1x8x256xf32>
    %43 = arith.mulf %0, %42 : vector<1x8x256xf32>
    %44 = vector.extract_strided_slice %40 {offsets = [0, 2, 0], sizes = [1, 1, 1], strides = [1, 1, 1]} : vector<1x4x1xf32> to vector<1x1x1xf32>
    %45 = vector.broadcast %44 : vector<1x1x1xf32> to vector<1x8x256xf32>
    %46 = arith.addf %43, %45 : vector<1x8x256xf32>
    %47 = vector.extract_strided_slice %40 {offsets = [0, 1, 0], sizes = [1, 1, 1], strides = [1, 1, 1]} : vector<1x4x1xf32> to vector<1x1x1xf32>
    %48 = vector.broadcast %47 : vector<1x1x1xf32> to vector<1x8x256xf32>
    %49 = arith.mulf %0, %48 : vector<1x8x256xf32>
    %50 = vector.extract_strided_slice %40 {offsets = [0, 3, 0], sizes = [1, 1, 1], strides = [1, 1, 1]} : vector<1x4x1xf32> to vector<1x1x1xf32>
    %51 = vector.broadcast %50 : vector<1x1x1xf32> to vector<1x8x256xf32>
    %52 = arith.addf %49, %51 : vector<1x8x256xf32>
    %53 = arith.maximumf %46, %52 : vector<1x8x256xf32>
    %c0_17 = arith.constant 0 : index
    %c0_18 = arith.constant 0 : index
    %c0_19 = arith.constant 0 : index
    %54 = vector.load %arg6[%c0_17, %c0_18, %c0_19] : memref<1x8x256xf32, #tpu.memory_space<vmem>>, vector<1x8x256xf32>
    tpu.vector_store %arg6[%c0_17, %c0_18, %c0_19], %53 {strides = array<i32>} : memref<1x8x256xf32, #tpu.memory_space<vmem>>, vector<1x8x256xf32>,
    return
  }
  func.func @transform_0(%arg0: i32) -> (i32, i32, i32) {
    %c0_i32 = arith.constant 0 : i32
    %c0_i32_0 = arith.constant 0 : i32
    %c0_i32_1 = arith.constant 0 : i32
    return %arg0, %c0_i32, %c0_i32_0 : i32, i32, i32
  }
  func.func @transform_1(%arg0: i32) -> (i32, i32) {
    %c0_i32 = arith.constant 0 : i32
    %c0_i32_0 = arith.constant 0 : i32
    %c0_i32_1 = arith.constant 0 : i32
    return %c0_i32, %c0_i32_0 : i32, i32
  }
  func.func @transform_2(%arg0: i32) -> (i32, i32) {
    %c0_i32 = arith.constant 0 : i32
    %c0_i32_0 = arith.constant 0 : i32
    %c0_i32_1 = arith.constant 0 : i32
    return %c0_i32, %c0_i32_0 : i32, i32
  }
  func.func @transform_3(%arg0: i32) -> (i32, i32) {
    %c0_i32 = arith.constant 0 : i32
    %c0_i32_0 = arith.constant 0 : i32
    %c0_i32_1 = arith.constant 0 : i32
    return %c0_i32, %c0_i32_0 : i32, i32
  }
  func.func @transform_4(%arg0: i32) -> (i32, i32) {
    %c0_i32 = arith.constant 0 : i32
    %c0_i32_0 = arith.constant 0 : i32
    %c0_i32_1 = arith.constant 0 : i32
    return %c0_i32, %c0_i32_0 : i32, i32
  }
  func.func @transform_5(%arg0: i32) -> (i32, i32, i32) {
    %c0_i32 = arith.constant 0 : i32
    %c0_i32_0 = arith.constant 0 : i32
    %c0_i32_1 = arith.constant 0 : i32
    return %arg0, %c0_i32, %c0_i32_0 : i32, i32, i32
  }
}

</mosaic_0001>

<bundles_post_ra>
// kernel: tpu_custom_call.1
= control target key start
LH: loop header
LB: loop body
LE: loop exit
PB: predicated region body
PF: predicated region fallthrough
CT: control target
= control target key end

     0   :  { %10 = vsyncpa [#allocation3], 0  ;;  %s782_s0 = inlined_call_operand.hbm [shape: f32[2,8,256], index: 0, kind: input, shape index: {}]   ;;  %s783_s1 = inlined_call_operand.vmem [shape: f32[8,2], index: 1, kind: input, shape index: {}]   ;;  %s784_s2 = inlined_call_operand.vmem [shape: f32[1,2], index: 2, kind: input, shape index: {}]   ;;  %s785_s3 = inlined_call_operand.vmem [shape: f32[4,2], index: 3, kind: input, shape index: {}]   ;;  %s786_s4 = inlined_call_operand.vmem [shape: f32[4,3], index: 4, kind: input, shape index: {}]   ;;  %s787_s5 = inlined_call_operand.hbm [shape: f32[2,8,256], index: 5, kind: output, shape index: {}]  }
   0x1   :  { %12 = vsyncpa [#allocation3 + $0x1], 0 }
   0x2   :  { %13 = vsyncpa [#allocation4], 0 }
   0x3   :  { %15 = vsyncpa [#allocation4 + $0x1], 0  ;;  %s609_s18 = smov 0   ;;  %s611_s19 = smov 0  }
   0x4   :  { %s613_s20 = smov 0   ;;  %s615_s21 = smov 0  }
   0x5 LB: > { %s630_s22 = sadd.s32 4294967295, %s573_s21   ;;  %s403_s23 = sadd.s32 4294967294, %s573_s21   ;;  %s573_s21 = sphi %s615_s21, %s804_s21   ;;  %s569_s20 = sphi %s613_s20, %s803_s20   ;;  %s565_s19 = sphi %s611_s19, %s802_s19   ;;  %s561_s18 = sphi %s609_s18, %s801_s18  }
   0x6   : > { %s634_s24 = sadd.s32 1, %s573_s21   ;;  %s28_s25 = sadd.s32 1, %s569_s20 }
   0x7   : > { %s25_s26 = ssub.s32 %s573_s21, %s634_s24  ;;  %p35_p0 = scmp.ne.s32.totalorder %s569_s20, %s565_s19 }
   0x8   : > { %p26_p1 = scmp.eq.s32.totalorder %s25_s26, 0  ;;  %p36_p2 = scmp.eq.s32.totalorder %s573_s21, 0 }
   0x9   : > { %p41_p3 = scmp.ne.s32.totalorder %s565_s19, %s561_s18  ;;  %p42_p4 = scmp.eq.s32.totalorder %s630_s22, 0 }
   0xa   : > { %s646_s27 = scalar_select %p26_p1, %s569_s20, %s28_s25  }
   0xb   : > { %p648_p5 = por %p36_p2, %p35_p0  ;;  %p652_p6 = por %p42_p4, %p41_p3 }
   0xc   : > { %p149_p7 = scmp.eq.s32.totalorder %s630_s22, 1  ;;  %p155_p8 = scmp.eq.s32.totalorder %s403_s23, 1 }
   0xd   : > { %s791_s29 = scalar_select %p652_p6, 1, 0 }
   0xe   : > { %p441_p10 = scmp.lt.s32.totalorder %s573_s21, 2  ;;  %p659_p11 = por %p149_p7, %p35_p0 }
   0xf   : > { %p663_p12 = por %p155_p8, %p41_p3  ;;  %s187_s7 = sand.u32 1, %s569_s20  }
  0x10   : > { %s792_s30 = scalar_select %p659_p11, 1, 0 }
  0x11   : > { %s793_s6 = scalar_select %p663_p12, 1, 0 }
  0x12   : > { %s419_s8 = sshll.u32 %s573_s21, 8  ;;  %s406_s9 = sshll.u32 %s187_s7, 4 }
  0x13   : > { %s672_s12 = scalar_lea.hbm %s782_s0, %s419_s8  ;;  %s191_s13 = scalar_lea.vmem [#allocation2], %s406_s9 }
  0x14   : > { %s199_s14 = sshll.u32 %s191_s13, 4  ;;  %p676_p13 = pnand %p441_p10, %p648_p5  ;;  %s680_s14 = int_to_ptr.vmem [resolvable:$true] %s199_s14 }
  0x15   : > { %s188_s16 = scalar_lea.sflag [#allocation3], %s187_s7  ;;  %s481_s17 = scalar_lea.hbm %s672_s12, 256 }
  0x16   : > { %p482_p2 = scmp.ne.s32.totalorder %s672_s12, %s481_s17  ;;  %p483_p3 = pneg %p676_p13 }
  0x17   : > { %s486_s26 = scalar_lea.hbm %s782_s0, 512  ;;  %p487_p5 = scmp.lt.s32.totalorder %s672_s12, %s782_s0 }
  0x18   : > { %p484_p4 = pnand %p483_p3, %p482_p2  ;;  %p488_p8 = scmp.lt.s32.totalorder %s486_s26, %s481_s17 }
  0x1a   : > { %p485_p7 = pneg %p484_p4  ;;  %p489_p10 = por %p488_p8, %p487_p5 }
  0x1c   : > { %p490_p9 = pnand %p489_p10, %p485_p7 }
  0x1e   : > { %493 = shalt.err (!%p490_p9)
}
  0x1f   : > { %s494_s7 = scalar_lea.vmem %s680_s14, 256  ;;  %s575_s9 = smov [#allocation2]  }
  0x20   : > { %p495_p0 = scmp.ne.s32.totalorder %s680_s14, %s494_s7  ;;  %s499_s10 = sshll.u32 %s575_s9, 4  ;;  %s500_s10 = int_to_ptr.vmem [resolvable:$false] %s499_s10 }
  0x21   : > { %s501_s11 = scalar_lea.vmem %s500_s10, 512  ;;  %p502_p4 = scmp.lt.s32.totalorder %s680_s14, %s500_s10 }
  0x22   : > { %p497_p1 = pnand %p495_p0, %p483_p3  ;;  %p503_p12 = scmp.lt.s32.totalorder %s501_s11, %s494_s7 }
  0x24   : > { %p498_p2 = pneg %p497_p1  ;;  %p504_p11 = por %p503_p12, %p502_p4 }
  0x26   : > { %p505_p6 = pnand %p504_p11, %p498_p2 }
  0x28   : > { %508 = shalt.err (!%p505_p6)
}
  0x29   : > { %436 = dma.hbm_to_vmem [thread:$0]  (!%p676_p13), %s672_s12, 256, %s680_s14, %s188_s16  }
  0x2a   : > { %p795_p9 = scmp.lt.s32.totalorder %s573_s21, 3  ;;  %p796_p7 = scmp.ge.s32.totalorder %s573_s21, 1 }
  0x2c   : > { %p205_p0 = pnand %p796_p7, %p795_p9 }
  0x2d   : > { %s707_s13 = sand.u32 (!%p205_p0), 1, %s565_s19   ;;  %p797_p6 = scmp.ne.s32.totalorder (!%p205_p0), %s791_s29, 0 }
  0x2e   : > { %208 = sbr.rel (%p205_p0) target bundleno = 472 (0x1d8), region = 40  ;;  %s410_s17 = sshll.u32 (!%p205_p0), %s707_s13, 4 }
  0x2f   : > { %s211_s23 = scalar_lea.sflag (!%p205_p0), [#allocation3], %s707_s13  ;;  %s214_s15 = scalar_lea.vmem (!%p205_p0), [#allocation2], %s410_s17 }
  0x33   : > { %552 = dma.done.wait (%p797_p6), %s211_s23, 256  }
  0x34   : > { %554 = vsyncadd (%p797_p6), %s211_s23, 4294967040  ;;  %v717_v0 = vld [vmem:[%s214_s15] sm:$0xff]  ;;  %v719_v1 = vld [vmem:[%s214_s15 + $0x8] sm:$0xff]  ;;  %s576_s16 = smov 127   ;;  %s577_s25 = smov 126   ;;  %vm250_vm0 = vcmask 15360   ;;  %v262_v12 = vlaneseq }
  0x35   : > { %v243_v2 = vadd.f32 %v719_v1, %v717_v0  ;;  %v271_v3 = vld [vmem:[%s786_s4] sm:$0xf]  ;;  %vm267_vm1 = vcmask 11264   ;;  %s420_s12 = sshll.u32 %s630_s22, 8  ;;  %s240_s14 = scalar_lea.vmem [#allocation5], %s410_s17 }
  0x36   : > { %282 = vrot.lane.b32.xlu1 %v271_v3, %s576_s16  ;;  %v248_v4 = vld [vmem:[%s783_s1] sm:$0xff]  ;;  %v263_v15 = vshrl.u32 %v262_v12, 7  ;;  %s333_s16 = sshll.u32 %s240_s14, 4  ;;  %s745_s28 = scalar_lea.hbm %s787_s5, %s420_s12  ;;  %s334_s16 = int_to_ptr.vmem [resolvable:$true] %s333_s16 }
  0x37   : > { %244 = vadd.xlane.f32.xlu0 %v243_v2  ;;  %v258_v16 = vld [vmem:[%s784_s2] sm:$0x1]  ;;  %s319_s29 = scalar_lea.sflag [#allocation4], %s707_s13  ;;  %s509_s22 = scalar_lea.vmem %s334_s16, 256 }
  0x38   : > { %v264_v19 = vsub.s32 0, %v263_v15  ;;  %v261_v21 = vld [vmem:[%s785_s3] sm:$0xf]  ;;  %p510_p11 = scmp.ne.s32.totalorder %s334_s16, %s509_s22  ;;  %p798_p12 = scmp.ne.s32.totalorder %s792_s30, 0 }
  0x39   : > { %s578_s17 = smov [#allocation5]  }
  0x3a   : > { %286 = vrot.lane.b32.xlu1 %v271_v3, %s577_s25  ;;  %p511_p13 = pnand %p510_p11, %p798_p12  ;;  %s513_s8 = sshll.u32 %s578_s17, 4  ;;  %s514_s8 = int_to_ptr.vmem [resolvable:$false] %s513_s8 }
  0x3b   : > { %s515_s7 = scalar_lea.vmem %s514_s8, 512  ;;  %p516_p3 = scmp.lt.s32.totalorder %s334_s16, %s514_s8 }
  0x3c   : > { %p512_p1 = pneg %p511_p13  ;;  %p517_p5 = scmp.lt.s32.totalorder %s515_s7, %s509_s22 }
  0x3e   : > { %p518_p8 = por %p517_p5, %p516_p3 }
  0x40   : > { %p519_p10 = pnand %p518_p8, %p512_p1 }
  0xa8   : > { %v283_v30 = vpop.permute.xlu1 %282 }
  0xac   : > { %v287_v34 = vpop.permute.xlu1 %286 }
  0xc0   : > { %v245_v5 = vpop.xlane.xlu0 %244 }
  0xc1   : > { %v247_v6 = vmul.f32 0.00390625, %v245_v5 }
  0xc3   : > { %v249_v7 = vmul.f32 %v248_v4, %v247_v6 }
  0xc5   : > { %v251_v8 = vsel %vm250_vm0, %v249_v7, 0.0 }
  0xc6   : > { %v252_v9 = vrot.slane %v251_v8, 4 }
  0xc8   : > { %v253_v10 = vadd.f32 %v252_v9, %v251_v8 }
  0xca   : > { %v254_v11 = vrot.slane %v253_v10, 2 }
  0xcc   : > { %v255_v13 = vadd.f32 %v254_v11, %v253_v10 }
  0xce   : > { %v256_v14 = vrot.slane %v255_v13, 1 }
  0xd0   : > { %v257_v17 = vadd.f32 %v256_v14, %v255_v13 }
  0xd2   : > { %v259_v18 = vadd.f32 %v258_v16, %v257_v17 }
  0xd4   : > { %v260_v20 = vmax.f32 %v259_v18, 0.0 }
  0xd6   : > { %v265_v22 = vrot.slane %v260_v20, %v264_v19 }
  0xd8   : > { %v266_v23 = vmul.f32 %v265_v22, %v261_v21 }
  0xda   : > { %v268_v24 = vsel %vm267_vm1, %v266_v23, 0.0 }
  0xdb   : > { %269 = vadd.xlane.f32.xlu0 %v268_v24 }
 0x164   : > { %v270_v25 = vpop.xlane.xlu0 %269 }
 0x165   : > { %v272_v26 = vadd.f32 %v271_v3, %v270_v25 }
 0x167   : > { %v412_v27 = vmul.f32 -1.442695, %v272_v26 }
 0x169   : > { %477 = vpow2.f32 %v412_v27 }
 0x176   : > { %v478_v28 = vpop.eup %477 }
 0x177   : > { %v276_v29 = vadd.f32 1.0, %v478_v28 }
 0x179   : > { %479 = vrcp.f32 %v276_v29 }
 0x186   : > { %v480_v31 = vpop.eup %479 }
 0x187   : > { %v279_v32 = vmul.f32 2.0, %v480_v31 }
 0x189   : > { %v413_v33 = vadd.f32 -1.0, %v279_v32 }
 0x18b   : > { %v285_v35 = vmul.f32 %v413_v33, %v283_v30 }
 0x18d   : > { %v289_v36 = vadd.f32 %v287_v34, %v285_v35 }
 0x18f   : > { %421 = vpush %v289_v36  ;;  %v296_v37 = vrot.slane %v289_v36, 2  ;;  %v302_v38 = vrot.slane %v289_v36, 1  ;;  %v308_v39 = vrot.slane %v289_v36, 3 }
 0x191   : > { %423 = vpush %v296_v37 }
 0x192   : > { %425 = vpush %v302_v38 }
 0x193   : > { %427 = vpush %v308_v39 }
 0x1c0   : > { %s422_s10 = spop %421 }
 0x1c1   : > { %v292_v40 = vstv %s422_s10 }
 0x1c2   : > { %s424_s11 = spop %423  ;;  %v294_v41 = vmul.f32 %v292_v40, %v717_v0  ;;  %v295_v42 = vmul.f32 %v292_v40, %v719_v1 }
 0x1c3   : > { %s426_s23 = spop %425  ;;  %v298_v43 = vstv %s424_s11 }
 0x1c4   : > { %v304_v44 = vstv %s426_s23  ;;  %s428_s15 = spop %427  ;;  %v300_v48 = vadd.f32 %v298_v43, %v294_v41  ;;  %v301_v49 = vadd.f32 %v298_v43, %v295_v42 }
 0x1c5   : > { %v306_v45 = vmul.f32 %v304_v44, %v717_v0  ;;  %v307_v46 = vmul.f32 %v304_v44, %v719_v1  ;;  %v310_v47 = vstv %s428_s15 }
 0x1c7   : > { %v312_v50 = vadd.f32 %v310_v47, %v306_v45  ;;  %v313_v51 = vadd.f32 %v310_v47, %v307_v46 }
 0x1c9   : > { %v314_v52 = vmax.f32 %v300_v48, %v312_v50  ;;  %v315_v53 = vmax.f32 %v301_v49, %v313_v51 }
 0x1cb   : > { %316 = vst [vmem:[%s240_s14] sm:$0xff] %v314_v52  ;;  %317 = vst [vmem:[%s240_s14 + $0x8] sm:$0xff] %v315_v53 }
 0x1cc   : > { %522 = shalt.err (!%p519_p10)
}
 0x1cd   : > { %s523_s9 = scalar_lea.hbm %s745_s28, 256  ;;  %s527_s11 = scalar_lea.hbm %s787_s5, 512 }
 0x1ce   : > { %p524_p2 = scmp.ne.s32.totalorder %s745_s28, %s523_s9  ;;  %p528_p7 = scmp.lt.s32.totalorder %s745_s28, %s787_s5 }
 0x1cf   : > { %p529_p0 = scmp.lt.s32.totalorder %s527_s11, %s523_s9 }
 0x1d0   : > { %p525_p4 = pnand %p524_p2, %p798_p12 }
 0x1d1   : > { %p530_p6 = por %p529_p0, %p528_p7 }
 0x1d2   : > { %p526_p9 = pneg %p525_p4 }
 0x1d4   : > { %p531_p11 = pnand %p530_p6, %p526_p9 }
 0x1d6   : > { %534 = shalt.err (!%p531_p11)
}
 0x1d7   : > { %431 = dma.vmem_to_hbm [thread:$0]  (%p798_p12), %s334_s16, 256, %s745_s28, %s319_s29  }
 0x1d8 PF: > { %s345_s12 = sand.u32 1, %s561_s18   ;;  %p799_p13 = scmp.ne.s32.totalorder %s793_s6, 0 }
 0x1d9   : > { %p800_p1 = scmp.ge.s32.totalorder %s573_s21, 2  ;;  %s346_s14 = scalar_lea.sflag [#allocation4], %s345_s12 }
 0x1db   : > { %p438_p3 = pnand %p800_p1, %p799_p13 }
 0x1dd   : > { %p439_p5 = pneg %p438_p3 }
 0x1df   : > { %556 = dma.done.wait (%p439_p5), %s346_s14, 256  }
 0x1e0   : > { %558 = vsyncadd (%p439_p5), %s346_s14, 4294967040  ;;  %p18_p8 = scmp.ge.s32.totalorder %s634_s24, 4   ;;  %s801_s18 = smov %s565_s19 }
 0x1e1   : > { %s802_s19 = smov %s569_s20  ;;  %s803_s20 = smov %s646_s27 }
 0x1e2   : > { %s804_s21 = smov %s634_s24  ;;  %20 = sbr.rel (!%p18_p8) target bundleno = 5 (0x5), region = 85 }
 0x1e7   :  { %351 = vsyncpa [#allocation3], 1 }
 0x1e8   :  { %353 = vsyncpa [#allocation3 + $0x1], 1 }
 0x1e9   :  { %354 = vsyncpa [#allocation4], 1 }
 0x1ea   :  { %356 = vsyncpa [#allocation4 + $0x1], 1 }

</bundles_post_ra>
